<compile_context>
chip_gen: v7x
topology: tpu7x:2x2x1
jax: 0.10.0
libtpu: 0.0.40
codegen_flags: <defaults>
</compile_context>

<pallas_src>
import functools

import jax
import jax.numpy as jnp
from jax.experimental import pallas as pl
from jax.experimental.pallas import tpu as pltpu


def _edge_map(x, W, col_first, col_last, row_first, row_last):
    """x: (TB, HW) raw input in [-1, 1], planes flattened row-major (lane = i*W + j).

    Computes maxpool3x3(sqrt(dx^2 + dy^2)) of the normalized image
    a = (x*127.5 + 127.5)/255 = 0.5*x + 0.5, with the 0.5 normalization scale
    folded into the central-difference 0.5 factor (=> 0.25 on raw x).
    Replicate-edge shifts are implemented as lane rolls + a masked select.
    """
    HW = x.shape[-1]

    def wplus(v):   # v[i, j+1], edge-replicated
        return jnp.where(col_last, v, pltpu.roll(v, HW - 1, 1))

    def wminus(v):  # v[i, j-1], edge-replicated
        return jnp.where(col_first, v, pltpu.roll(v, 1, 1))

    def hplus(v):   # v[i+1, j], edge-replicated
        return jnp.where(row_last, v, pltpu.roll(v, HW - W, 1))

    def hminus(v):  # v[i-1, j], edge-replicated
        return jnp.where(row_first, v, pltpu.roll(v, W, 1))

    dx = (wplus(x) - wminus(x)) * 0.25
    dy = (hplus(x) - hminus(x)) * 0.25
    u = jnp.sqrt(dx * dx + dy * dy)            # u >= 0
    # Separable 3x3 max pool, stride 1, pad 1. Replicate-shift duplicates a
    # value already inside the clipped border window, so the result equals
    # PyTorch's padded MaxPool2d(3, 1, 1) (u >= 0 makes 0-pad irrelevant).
    mw = jnp.maximum(jnp.maximum(wminus(u), u), wplus(u))
    return jnp.maximum(jnp.maximum(hminus(mw), mw), hplus(mw))


def attention_kernel(x_ref, out_ref, *, W):
    """x_ref/out_ref: (2, TB, HW); slab 0 = ir planes, slab 1 = rgb planes."""
    tb, hw = x_ref.shape[1], x_ref.shape[2]
    lane = jax.lax.broadcasted_iota(jnp.int32, (tb, hw), 1)
    col = lane % W
    col_first = col == 0
    col_last = col == W - 1
    row_first = lane < W
    row_last = lane >= hw - W

    ir_e = _edge_map(x_ref[0], W, col_first, col_last, row_first, row_last)
    rgb_e = _edge_map(x_ref[1], W, col_first, col_last, row_first, row_last)

    inv = 1.0 / (ir_e + rgb_e + 1e-05)   # exact: keeps the 1e-5 tolerance
    out_ref[0] = (ir_e * inv - 0.5) * 2.0
    out_ref[1] = (rgb_e * inv - 0.5) * 2.0


def _block_planes(n, hw, budget_bytes=2 * 1024 * 1024):
    """Pick plane-block size TB (multiple of 8) and padded plane count Npad."""
    npad = ((n + 7) // 8) * 8                                   # sublane align
    tb_cap = max(8, (budget_bytes // (2 * hw * 4)) // 8 * 8)    # ~2 MiB blocks
    tb = min(npad, tb_cap)
    # Prefer >=2 grid steps (when alignment makes it free) so v7x's two
    # TensorCores both get a share of the "parallel" plane axis.
    if tb >= npad and npad >= 16 and npad % 16 == 0:
        tb = npad // 2
    npad = ((npad + tb - 1) // tb) * tb                         # exact tiling
    return tb, npad


def attention_pallas(ir, rgb):
    """ir, rgb: (B, C, H, W) float32 -> (edgemap_ir, edgemap_rgb) same shape."""
    B, C, H, W = ir.shape
    assert rgb.shape == ir.shape, "this implementation assumes matching shapes"
    N = B * C
    HW = H * W
    ir = ir.astype(jnp.float32)
    rgb = rgb.astype(jnp.float32)

    # Lane-dense repack: each plane becomes one length-HW row (lane axis = HW),
    # and ir/rgb are stacked so each grid step needs 1 input + 1 output DMA.
    x = jnp.stack([ir.reshape(N, HW), rgb.reshape(N, HW)], axis=0)  # (2, N, HW)

    TB, Npad = _block_planes(N, HW)
    if Npad > N:
        x = jnp.pad(x, ((0, 0), (0, Npad - N), (0, 0)))

    grid = (Npad // TB,)
    spec = pl.BlockSpec((2, TB, HW), lambda i: (0, i, 0))
    block_bytes = 2 * TB * HW * 4
    vmem_limit = min(48 * 1024 * 1024, max(16 * 1024 * 1024, 8 * block_bytes))

    out = pl.pallas_call(
        functools.partial(attention_kernel, W=W),
        out_shape=jax.ShapeDtypeStruct((2, Npad, HW), jnp.float32),
        grid=grid,
        in_specs=[spec],
        out_specs=spec,
        compiler_params=pltpu.CompilerParams(
            dimension_semantics=("parallel",),
            vmem_limit_bytes=vmem_limit,
        ),
    )(x)

    out_ir = out[0, :N].reshape(B, C, H, W)
    out_rgb = out[1, :N].reshape(B, C, H, W)
    return out_ir, out_rgb


def _attention_ref(ir, rgb):
    """Pure-JAX reference matching the PyTorch module exactly."""
    def edge_map(x):
        xp = jnp.pad(x, ((0, 0), (0, 0), (1, 1), (1, 1)), mode="edge")
        dx = (xp[:, :, 1:-1, 2:] - xp[:, :, 1:-1, :-2]) * 0.5
        dy = (xp[:, :, 2:, 1:-1] - xp[:, :, :-2, 1:-1]) * 0.5
        u = jnp.sqrt(dx * dx + dy * dy)
        up = jnp.pad(u, ((0, 0), (0, 0), (1, 1), (1, 1)), constant_values=0.0)
        H, W = x.shape[-2:]
        m = u
        for di in range(3):
            for dj in range(3):
                m = jnp.maximum(m, up[:, :, di:di + H, dj:dj + W])
        return m

    ir_a = (ir * 127.5 + 127.5) / 255.0
    rgb_a = (rgb * 127.5 + 127.5) / 255.0
    ir_e = edge_map(ir_a)
    rgb_e = edge_map(rgb_a)
    e_ir = (ir_e / (ir_e + rgb_e + 1e-05) - 0.5) * 2.0
    e_rgb = (rgb_e / (ir_e + rgb_e + 1e-05) - 0.5) * 2.0
    return e_ir, e_rgb


if __name__ == "__main__":
    key = jax.random.PRNGKey(0)
    k1, k2 = jax.random.split(key)
    B, C, H, W = 2, 3, 16, 16
    ir = jax.random.uniform(k1, (B, C, H, W), jnp.float32, -1.0, 1.0)
    rgb = jax.random.uniform(k2, (B, C, H, W), jnp.float32, -1.0, 1.0)

    out_ir, out_rgb = attention_pallas(ir, rgb)
    jax.block_until_ready((out_ir, out_rgb))

    ref_ir, ref_rgb = _attention_ref(ir, rgb)
    assert jnp.allclose(out_ir, ref_ir, atol=1e-5, rtol=1e-5)
    assert jnp.allclose(out_rgb, ref_rgb, atol=1e-5, rtol=1e-5)
    print("KERNEL_OK")
</pallas_src>

<mosaic_0001>
module attributes {stable_mosaic.version = 11 : i64} {
  func.func @attention_kernel(%arg0: i32, %arg1: memref<2x8x256xf32, #tpu.memory_space<vmem>>, %arg2: memref<2x8x256xf32, #tpu.memory_space<vmem>>) attributes {dimension_semantics = [#tpu.dimension_semantics<parallel>], iteration_bounds = array<i64: 1>, scalar_prefetch = 0 : i64, scratch_operands = 0 : i64, tpu.core_type = #tpu.core_type<tc>, window_params = [{transform_indices = @transform_0, window_bounds = array<i64: 2, 8, 256>}, {transform_indices = @transform_1, window_bounds = array<i64: 2, 8, 256>}]} {
    %0 = tpu.iota {dimensions = array<i32: 1>} : vector<8x256xi32>
    %c16_i32 = arith.constant 16 : i32
    %c0_i32 = arith.constant 0 : i32
    %1 = arith.cmpi eq, %c16_i32, %c0_i32 : i32
    %c1_i32 = arith.constant 1 : i32
    %2 = arith.select %1, %c1_i32, %c16_i32 : i32
    %3 = vector.broadcast %2 : i32 to vector<8x256xi32>
    %4 = arith.remsi %0, %3 : vector<8x256xi32>
    %c0_i32_0 = arith.constant 0 : i32
    %5 = vector.broadcast %c0_i32_0 : i32 to vector<8x256xi32>
    %6 = arith.cmpi ne, %4, %5 : vector<8x256xi32>
    %c0_i32_1 = arith.constant 0 : i32
    %7 = vector.broadcast %c0_i32_1 : i32 to vector<8x256xi32>
    %8 = arith.cmpi slt, %4, %7 : vector<8x256xi32>
    %c0_i32_2 = arith.constant 0 : i32
    %9 = arith.cmpi slt, %2, %c0_i32_2 : i32
    %10 = vector.broadcast %9 : i1 to vector<8x256xi1>
    %11 = vector.broadcast %10 : vector<8x256xi1> to vector<8x256xi1>
    %12 = arith.xori %8, %11 : vector<8x256xi1>
    %13 = arith.andi %12, %6 : vector<8x256xi1>
    %14 = vector.broadcast %2 : i32 to vector<8x256xi32>
    %15 = arith.addi %4, %14 : vector<8x256xi32>
    %16 = arith.select %13, %15, %4 : vector<8x256xi1>, vector<8x256xi32>
    %c0_i32_3 = arith.constant 0 : i32
    %17 = vector.broadcast %c0_i32_3 : i32 to vector<8x256xi32>
    %18 = arith.cmpi eq, %16, %17 : vector<8x256xi32>
    %c15_i32 = arith.constant 15 : i32
    %19 = vector.broadcast %c15_i32 : i32 to vector<8x256xi32>
    %20 = arith.cmpi eq, %16, %19 : vector<8x256xi32>
    %c16_i32_4 = arith.constant 16 : i32
    %21 = vector.broadcast %c16_i32_4 : i32 to vector<8x256xi32>
    %22 = arith.cmpi slt, %0, %21 : vector<8x256xi32>
    %c240_i32 = arith.constant 240 : i32
    %23 = vector.broadcast %c240_i32 : i32 to vector<8x256xi32>
    %24 = arith.cmpi sge, %0, %23 : vector<8x256xi32>
    %c0 = arith.constant 0 : index
    %c0_5 = arith.constant 0 : index
    %c0_6 = arith.constant 0 : index
    %25 = vector.load %arg1[%c0, %c0_5, %c0_6] : memref<2x8x256xf32, #tpu.memory_space<vmem>>, vector<1x8x256xf32>
    %26 = vector.shape_cast %25 : vector<1x8x256xf32> to vector<8x256xf32>
    %c255_i32 = arith.constant 255 : i32
    %27 = tpu.dynamic_rotate %26 by %c255_i32 dim 1 : vector<8x256xf32>, i32 -> vector<8x256xf32>
    %28 = arith.select %20, %26, %27 : vector<8x256xi1>, vector<8x256xf32>
    %c1_i32_7 = arith.constant 1 : i32
    %29 = tpu.dynamic_rotate %26 by %c1_i32_7 dim 1 : vector<8x256xf32>, i32 -> vector<8x256xf32>
    %30 = arith.select %18, %26, %29 : vector<8x256xi1>, vector<8x256xf32>
    %31 = arith.subf %28, %30 : vector<8x256xf32>
    %cst = arith.constant 2.500000e-01 : f32
    %32 = vector.broadcast %cst : f32 to vector<8x256xf32>
    %33 = arith.mulf %31, %32 : vector<8x256xf32>
    %c240_i32_8 = arith.constant 240 : i32
    %34 = tpu.dynamic_rotate %26 by %c240_i32_8 dim 1 : vector<8x256xf32>, i32 -> vector<8x256xf32>
    %35 = arith.select %24, %26, %34 : vector<8x256xi1>, vector<8x256xf32>
    %c16_i32_9 = arith.constant 16 : i32
    %36 = tpu.dynamic_rotate %26 by %c16_i32_9 dim 1 : vector<8x256xf32>, i32 -> vector<8x256xf32>
    %37 = arith.select %22, %26, %36 : vector<8x256xi1>, vector<8x256xf32>
    %38 = arith.subf %35, %37 : vector<8x256xf32>
    %cst_10 = arith.constant 2.500000e-01 : f32
    %39 = vector.broadcast %cst_10 : f32 to vector<8x256xf32>
    %40 = arith.mulf %38, %39 : vector<8x256xf32>
    %41 = arith.mulf %33, %33 : vector<8x256xf32>
    %42 = arith.mulf %40, %40 : vector<8x256xf32>
    %43 = arith.addf %41, %42 : vector<8x256xf32>
    %44 = math.sqrt %43 : vector<8x256xf32>
    %c1_i32_11 = arith.constant 1 : i32
    %45 = tpu.dynamic_rotate %44 by %c1_i32_11 dim 1 : vector<8x256xf32>, i32 -> vector<8x256xf32>
    %46 = arith.select %18, %44, %45 : vector<8x256xi1>, vector<8x256xf32>
    %47 = arith.maximumf %46, %44 : vector<8x256xf32>
    %c255_i32_12 = arith.constant 255 : i32
    %48 = tpu.dynamic_rotate %44 by %c255_i32_12 dim 1 : vector<8x256xf32>, i32 -> vector<8x256xf32>
    %49 = arith.select %20, %44, %48 : vector<8x256xi1>, vector<8x256xf32>
    %50 = arith.maximumf %47, %49 : vector<8x256xf32>
    %c16_i32_13 = arith.constant 16 : i32
    %51 = tpu.dynamic_rotate %50 by %c16_i32_13 dim 1 : vector<8x256xf32>, i32 -> vector<8x256xf32>
    %52 = arith.select %22, %50, %51 : vector<8x256xi1>, vector<8x256xf32>
    %53 = arith.maximumf %52, %50 : vector<8x256xf32>
    %c240_i32_14 = arith.constant 240 : i32
    %54 = tpu.dynamic_rotate %50 by %c240_i32_14 dim 1 : vector<8x256xf32>, i32 -> vector<8x256xf32>
    %55 = arith.select %24, %50, %54 : vector<8x256xi1>, vector<8x256xf32>
    %56 = arith.maximumf %53, %55 : vector<8x256xf32>
    %c1 = arith.constant 1 : index
    %c0_15 = arith.constant 0 : index
    %c0_16 = arith.constant 0 : index
    %57 = vector.load %arg1[%c1, %c0_15, %c0_16] : memref<2x8x256xf32, #tpu.memory_space<vmem>>, vector<1x8x256xf32>
    %58 = vector.shape_cast %57 : vector<1x8x256xf32> to vector<8x256xf32>
    %c255_i32_17 = arith.constant 255 : i32
    %59 = tpu.dynamic_rotate %58 by %c255_i32_17 dim 1 : vector<8x256xf32>, i32 -> vector<8x256xf32>
    %60 = arith.select %20, %58, %59 : vector<8x256xi1>, vector<8x256xf32>
    %c1_i32_18 = arith.constant 1 : i32
    %61 = tpu.dynamic_rotate %58 by %c1_i32_18 dim 1 : vector<8x256xf32>, i32 -> vector<8x256xf32>
    %62 = arith.select %18, %58, %61 : vector<8x256xi1>, vector<8x256xf32>
    %63 = arith.subf %60, %62 : vector<8x256xf32>
    %cst_19 = arith.constant 2.500000e-01 : f32
    %64 = vector.broadcast %cst_19 : f32 to vector<8x256xf32>
    %65 = arith.mulf %63, %64 : vector<8x256xf32>
    %c240_i32_20 = arith.constant 240 : i32
    %66 = tpu.dynamic_rotate %58 by %c240_i32_20 dim 1 : vector<8x256xf32>, i32 -> vector<8x256xf32>
    %67 = arith.select %24, %58, %66 : vector<8x256xi1>, vector<8x256xf32>
    %c16_i32_21 = arith.constant 16 : i32
    %68 = tpu.dynamic_rotate %58 by %c16_i32_21 dim 1 : vector<8x256xf32>, i32 -> vector<8x256xf32>
    %69 = arith.select %22, %58, %68 : vector<8x256xi1>, vector<8x256xf32>
    %70 = arith.subf %67, %69 : vector<8x256xf32>
    %cst_22 = arith.constant 2.500000e-01 : f32
    %71 = vector.broadcast %cst_22 : f32 to vector<8x256xf32>
    %72 = arith.mulf %70, %71 : vector<8x256xf32>
    %73 = arith.mulf %65, %65 : vector<8x256xf32>
    %74 = arith.mulf %72, %72 : vector<8x256xf32>
    %75 = arith.addf %73, %74 : vector<8x256xf32>
    %76 = math.sqrt %75 : vector<8x256xf32>
    %c1_i32_23 = arith.constant 1 : i32
    %77 = tpu.dynamic_rotate %76 by %c1_i32_23 dim 1 : vector<8x256xf32>, i32 -> vector<8x256xf32>
    %78 = arith.select %18, %76, %77 : vector<8x256xi1>, vector<8x256xf32>
    %79 = arith.maximumf %78, %76 : vector<8x256xf32>
    %c255_i32_24 = arith.constant 255 : i32
    %80 = tpu.dynamic_rotate %76 by %c255_i32_24 dim 1 : vector<8x256xf32>, i32 -> vector<8x256xf32>
    %81 = arith.select %20, %76, %80 : vector<8x256xi1>, vector<8x256xf32>
    %82 = arith.maximumf %79, %81 : vector<8x256xf32>
    %c16_i32_25 = arith.constant 16 : i32
    %83 = tpu.dynamic_rotate %82 by %c16_i32_25 dim 1 : vector<8x256xf32>, i32 -> vector<8x256xf32>
    %84 = arith.select %22, %82, %83 : vector<8x256xi1>, vector<8x256xf32>
    %85 = arith.maximumf %84, %82 : vector<8x256xf32>
    %c240_i32_26 = arith.constant 240 : i32
    %86 = tpu.dynamic_rotate %82 by %c240_i32_26 dim 1 : vector<8x256xf32>, i32 -> vector<8x256xf32>
    %87 = arith.select %24, %82, %86 : vector<8x256xi1>, vector<8x256xf32>
    %88 = arith.maximumf %85, %87 : vector<8x256xf32>
    %89 = arith.addf %56, %88 : vector<8x256xf32>
    %cst_27 = arith.constant 9.99999974E-6 : f32
    %90 = vector.broadcast %cst_27 : f32 to vector<8x256xf32>
    %91 = arith.addf %89, %90 : vector<8x256xf32>
    %cst_28 = arith.constant 1.000000e+00 : f32
    %92 = vector.broadcast %cst_28 : f32 to vector<8x256xf32>
    %93 = arith.divf %92, %91 : vector<8x256xf32>
    %94 = arith.mulf %56, %93 : vector<8x256xf32>
    %cst_29 = arith.constant 5.000000e-01 : f32
    %95 = vector.broadcast %cst_29 : f32 to vector<8x256xf32>
    %96 = arith.subf %94, %95 : vector<8x256xf32>
    %cst_30 = arith.constant 2.000000e+00 : f32
    %97 = vector.broadcast %cst_30 : f32 to vector<8x256xf32>
    %98 = arith.mulf %96, %97 : vector<8x256xf32>
    %c0_31 = arith.constant 0 : index
    %c0_32 = arith.constant 0 : index
    %c0_33 = arith.constant 0 : index
    %99 = vector.load %arg2[%c0_31, %c0_32, %c0_33] : memref<2x8x256xf32, #tpu.memory_space<vmem>>, vector<1x8x256xf32>
    %100 = vector.shape_cast %99 : vector<1x8x256xf32> to vector<8x256xf32>
    %101 = vector.shape_cast %98 : vector<8x256xf32> to vector<1x8x256xf32>
    tpu.vector_store %arg2[%c0_31, %c0_32, %c0_33], %101 {strides = array<i32>} : memref<2x8x256xf32, #tpu.memory_space<vmem>>, vector<1x8x256xf32>,
    %102 = arith.mulf %88, %93 : vector<8x256xf32>
    %cst_34 = arith.constant 5.000000e-01 : f32
    %103 = vector.broadcast %cst_34 : f32 to vector<8x256xf32>
    %104 = arith.subf %102, %103 : vector<8x256xf32>
    %cst_35 = arith.constant 2.000000e+00 : f32
    %105 = vector.broadcast %cst_35 : f32 to vector<8x256xf32>
    %106 = arith.mulf %104, %105 : vector<8x256xf32>
    %c1_36 = arith.constant 1 : index
    %c0_37 = arith.constant 0 : index
    %c0_38 = arith.constant 0 : index
    %107 = vector.load %arg2[%c1_36, %c0_37, %c0_38] : memref<2x8x256xf32, #tpu.memory_space<vmem>>, vector<1x8x256xf32>
    %108 = vector.shape_cast %107 : vector<1x8x256xf32> to vector<8x256xf32>
    %109 = vector.shape_cast %106 : vector<8x256xf32> to vector<1x8x256xf32>
    tpu.vector_store %arg2[%c1_36, %c0_37, %c0_38], %109 {strides = array<i32>} : memref<2x8x256xf32, #tpu.memory_space<vmem>>, vector<1x8x256xf32>,
    return
  }
  func.func @transform_0(%arg0: i32) -> (i32, i32, i32) {
    %c0_i32 = arith.constant 0 : i32
    %c0_i32_0 = arith.constant 0 : i32
    %c0_i32_1 = arith.constant 0 : i32
    return %c0_i32, %arg0, %c0_i32_0 : i32, i32, i32
  }
  func.func @transform_1(%arg0: i32) -> (i32, i32, i32) {
    %c0_i32 = arith.constant 0 : i32
    %c0_i32_0 = arith.constant 0 : i32
    %c0_i32_1 = arith.constant 0 : i32
    return %c0_i32, %arg0, %c0_i32_0 : i32, i32, i32
  }
}

</mosaic_0001>

<bundles_post_ra>
// kernel: tpu_custom_call.1
= control target key start
LH: loop header
LB: loop body
LE: loop exit
PB: predicated region body
PF: predicated region fallthrough
CT: control target
= control target key end

     0   :  { %6 = vsyncpa [#allocation3], 0  ;;  %s616_s0 = inlined_call_operand.hbm [shape: f32[2,8,256], index: 0, kind: input, shape index: {}]   ;;  %s617_s1 = inlined_call_operand.hbm [shape: f32[2,8,256], index: 1, kind: output, shape index: {}]  }
   0x1   :  { %7 = vsyncpa [#allocation4], 0  ;;  %s379_s6 = smov [#allocation2]   ;;  %s331_s10 = scalar_lea.hbm %s616_s0, 512 }
   0x2   :  { %s13_s7 = sshll.u32 %s379_s6, 4  ;;  %p332_p0 = scmp.ne.s32.totalorder %s616_s0, %s331_s10  ;;  %s14_s7 = int_to_ptr.vmem [resolvable:$true] %s13_s7 }
   0x3   :  { %p335_p1 = scmp.lt.u32.totalorder %s331_s10, %s616_s0 }
   0x5   :  { %p337_p2 = pnand %p335_p1, %p332_p0 }
   0x7   :  { %340 = shalt.err (!%p337_p2)
}
   0x8   :  { %s341_s15 = scalar_lea.vmem %s14_s7, 512  ;;  %p346_p4 = scmp.lt.s32.totalorder %s14_s7, %s14_s7 }
   0x9   :  { %p342_p3 = scmp.ne.s32.totalorder %s14_s7, %s341_s15  ;;  %p347_p5 = scmp.lt.s32.totalorder %s341_s15, %s341_s15 }
   0xb   :  { %p348_p6 = por %p347_p5, %p346_p4 }
   0xd   :  { %p349_p7 = pnand %p348_p6, %p342_p3 }
   0xf   :  { %352 = shalt.err (!%p349_p7)
}
  0x10   :  { %s380_s16 = smov 256   ;;  %s381_s17 = smov 16  }
  0x11   :  { %19 = dma.hbm_to_vmem [thread:$0]  %s616_s0, 512, %s14_s7, [#allocation3], %s380_s16, %s380_s16, %s381_s17  }
  0x12   :  { %375 = dma.done.wait [#allocation3], 512  }
  0x13   :  { %376 = vsyncadd [#allocation3], 4294966784  ;;  %v58_v0 = vld [vmem:[#allocation2] sm:$0xff]  ;;  %s382_s20 = smov 1   ;;  %s383_s21 = smov 127   ;;  %v59_v1 = vld [vmem:[#allocation2 + $0x8] sm:$0xff]  ;;  %v23_v4 = vlaneseq }
  0x14   :  { %69 = vrot.lane.b32.xlu1 %v58_v0, %s382_s20  ;;  %60 = vrot.lane.b32.xlu0 %v58_v0, %s383_s21  ;;  %s384_s22 = smov 112   ;;  %v419_v2 = vld [vmem:[#allocation2 + $0x18] sm:$0xff]  ;;  %v421_v3 = vld [vmem:[#allocation2 + $0x10] sm:$0xff]  ;;  %s385_s0 = smov [#allocation5]  }
  0x15   :  { %v439_v5 = vand.u32 127, %v23_v4  ;;  %s296_s23 = sshll.u32 %s385_s0, 4  ;;  %s297_s23 = int_to_ptr.vmem [resolvable:$true] %s296_s23 }
  0x16   :  { %s353_s24 = scalar_lea.vmem %s297_s23, 512  ;;  %p358_p9 = scmp.lt.s32.totalorder %s297_s23, %s297_s23 }
  0x17   :  { %v442_v6 = vadd.s32 128, %v439_v5  ;;  %v30_v9 = vand.u32 15, %v439_v5  ;;  %vm73_vm0 = vcmp.lt.s32.totalorder %v439_v5, 1  ;;  %vm64_vm1 = vcmp.lt.s32.totalorder %v439_v5, 127  ;;  %p354_p8 = scmp.ne.s32.totalorder %s297_s23, %s353_s24  ;;  %p359_p10 = scmp.lt.s32.totalorder %s353_s24, %s353_s24 }
  0x18   :  { %71 = vrot.lane.b32.xlu1 %v59_v1, %s382_s20  ;;  %62 = vrot.lane.b32.xlu0 %v59_v1, %s383_s21  ;;  %vm86_vm6 = vcmp.lt.s32.totalorder %v439_v5, 112  ;;  %vm54_vm7 = vcmp.lt.s32.totalorder %v439_v5, 16 }
  0x19   :  { %v37_v10 = vand.u32 15, %v442_v6  ;;  %vm448_vm2 = vcmp.eq.s32.totalorder %v30_v9, 0  ;;  %vm456_vm4 = vcmp.eq.s32.totalorder %v30_v9, 15  ;;  %vm57_vm8 = vcmp.ge.s32.totalorder %v442_v6, 240  ;;  %p360_p11 = por %p359_p10, %p358_p9 }
  0x1b   :  { %vm452_vm3 = vcmp.eq.s32.totalorder %v37_v10, 0  ;;  %vm460_vm5 = vcmp.eq.s32.totalorder %v37_v10, 15  ;;  %p361_p12 = pnand %p360_p11, %p354_p8 }
  0x1c   :  { %84 = vrot.lane.b32.xlu1 %v59_v1, %s384_s22  ;;  %82 = vrot.lane.b32.xlu0 %v58_v0, %s384_s22 }
  0x20   :  { %93 = vrot.lane.b32.xlu1 %v59_v1, %s381_s17  ;;  %91 = vrot.lane.b32.xlu0 %v58_v0, %s381_s17 }
  0x24   :  { %168 = vrot.lane.b32.xlu1 %v419_v2, %s383_s21  ;;  %166 = vrot.lane.b32.xlu0 %v421_v3, %s383_s21 }
  0x28   :  { %176 = vrot.lane.b32.xlu1 %v419_v2, %s382_s20  ;;  %174 = vrot.lane.b32.xlu0 %v421_v3, %s382_s20 }
  0x2c   :  { %188 = vrot.lane.b32.xlu1 %v419_v2, %s384_s22  ;;  %186 = vrot.lane.b32.xlu0 %v421_v3, %s384_s22 }
  0x30   :  { %196 = vrot.lane.b32.xlu1 %v419_v2, %s381_s17  ;;  %194 = vrot.lane.b32.xlu0 %v421_v3, %s381_s17 }
  0x86   :  { %v70_v7 = vpop.permute.xlu1 %69  ;;  %v61_v8 = vpop.permute.xlu0 %60 }
  0x8a   :  { %v72_v13 = vpop.permute.xlu1 %71  ;;  %v63_v16 = vpop.permute.xlu0 %62 }
  0x8b   :  { %v74_v17 = vsel %vm73_vm0, %v70_v7, %v72_v13  ;;  %v75_v18 = vsel %vm73_vm0, %v72_v13, %v70_v7  ;;  %v65_v19 = vsel %vm64_vm1, %v61_v8, %v63_v16  ;;  %v66_v20 = vsel %vm64_vm1, %v63_v16, %v61_v8 }
  0x8c   :  { %v77_v21 = vsel %vm452_vm3, %v59_v1, %v74_v17  ;;  %v68_v22 = vsel %vm460_vm5, %v59_v1, %v66_v20  ;;  %v76_v23 = vsel %vm448_vm2, %v58_v0, %v75_v18  ;;  %v67_v24 = vsel %vm456_vm4, %v58_v0, %v65_v19 }
  0x8d   :  { %v79_v27 = vsub.f32 %v68_v22, %v77_v21  ;;  %v78_v29 = vsub.f32 %v67_v24, %v76_v23 }
  0x8e   :  { %v85_v25 = vpop.permute.xlu1 %84  ;;  %v83_v26 = vpop.permute.xlu0 %82 }
  0x8f   :  { %v88_v28 = vsel %vm86_vm6, %v85_v25, %v83_v26  ;;  %v81_v35 = vmul.f32 0.25, %v79_v27  ;;  %v87_v36 = vsel %vm86_vm6, %v83_v26, %v85_v25  ;;  %v80_v39 = vmul.f32 0.25, %v78_v29 }
  0x90   :  { %v90_v32 = vsel %vm57_vm8, %v59_v1, %v88_v28 }
  0x91   :  { %v104_v45 = vmul.f32 %v81_v35, %v81_v35  ;;  %v103_v47 = vmul.f32 %v80_v39, %v80_v39 }
  0x92   :  { %v94_v30 = vpop.permute.xlu1 %93  ;;  %v92_v31 = vpop.permute.xlu0 %91 }
  0x93   :  { %v95_v33 = vsel %vm54_vm7, %v92_v31, %v94_v30  ;;  %v96_v34 = vsel %vm54_vm7, %v94_v30, %v92_v31 }
  0x94   :  { %v97_v37 = vsel %vm54_vm7, %v58_v0, %v96_v34  ;;  %v100_v38 = vsub.f32 %v90_v32, %v95_v33 }
  0x95   :  { %v99_v40 = vsub.f32 %v87_v36, %v97_v37 }
  0x96   :  { %v102_v41 = vmul.f32 0.25, %v100_v38  ;;  %v169_v42 = vpop.permute.xlu1 %168  ;;  %v167_v43 = vpop.permute.xlu0 %166 }
  0x97   :  { %v101_v44 = vmul.f32 0.25, %v99_v40  ;;  %v171_v55 = vsel %vm64_vm1, %v169_v42, %v167_v43  ;;  %v170_v56 = vsel %vm64_vm1, %v167_v43, %v169_v42 }
  0x98   :  { %v106_v46 = vmul.f32 %v102_v41, %v102_v41  ;;  %v173_v61 = vsel %vm460_vm5, %v419_v2, %v171_v55  ;;  %v172_v62 = vsel %vm456_vm4, %v421_v3, %v170_v56 }
  0x99   :  { %v105_v48 = vmul.f32 %v101_v44, %v101_v44 }
  0x9a   :  { %v108_v49 = vadd.f32 %v106_v46, %v104_v45  ;;  %v177_v50 = vpop.permute.xlu1 %176  ;;  %v175_v51 = vpop.permute.xlu0 %174 }
  0x9b   :  { %v107_v52 = vadd.f32 %v105_v48, %v103_v47  ;;  %v178_v53 = vsel %vm73_vm0, %v175_v51, %v177_v50  ;;  %v179_v54 = vsel %vm73_vm0, %v177_v50, %v175_v51 }
  0x9c   :  { %319 = vrsqrt.f32 %v108_v49  ;;  %v181_v57 = vsel %vm452_vm3, %v419_v2, %v178_v53  ;;  %v180_v58 = vsel %vm448_vm2, %v421_v3, %v179_v54  ;;  %vm118_vm9 = vcmp.eq.f32.partialorder %v108_v49, inf }
  0x9d   :  { %321 = vrsqrt.f32 %v107_v52  ;;  %v183_v63 = vsub.f32 %v173_v61, %v181_v57  ;;  %v182_v1 = vsub.f32 %v172_v62, %v180_v58  ;;  %vm120_vm10 = vcmp.eq.f32.partialorder %v108_v49, 0.0 }
  0x9e   :  { %v189_v59 = vpop.permute.xlu1 %188  ;;  %v187_v60 = vpop.permute.xlu0 %186  ;;  %v121_v27 = vand.u32 2147483648, %v108_v49  ;;  %vm111_vm11 = vcmp.eq.f32.partialorder %v107_v52, inf  ;;  %vm113_vm12 = vcmp.eq.f32.partialorder %v107_v52, 0.0 }
  0x9f   :  { %v191_v0 = vsel %vm86_vm6, %v189_v59, %v187_v60  ;;  %v185_v13 = vmul.f32 0.25, %v183_v63  ;;  %v190_v16 = vsel %vm86_vm6, %v187_v60, %v189_v59  ;;  %v184_v19 = vmul.f32 0.25, %v182_v1 }
  0xa0   :  { %v193_v8 = vsel %vm57_vm8, %v419_v2, %v191_v0 }
  0xa1   :  { %v207_v25 = vmul.f32 %v185_v13, %v185_v13  ;;  %v206_v28 = vmul.f32 %v184_v19, %v184_v19 }
  0xa2   :  { %v197_v4 = vpop.permute.xlu1 %196  ;;  %v195_v7 = vpop.permute.xlu0 %194 }
  0xa3   :  { %v198_v9 = vsel %vm54_vm7, %v195_v7, %v197_v4  ;;  %v199_v10 = vsel %vm54_vm7, %v197_v4, %v195_v7 }
  0xa4   :  { %v200_v17 = vsel %vm54_vm7, %v421_v3, %v199_v10  ;;  %v203_v18 = vsub.f32 %v193_v8, %v198_v9  ;;  %v114_v3 = vand.u32 2147483648, %v107_v52 }
  0xa5   :  { %v202_v20 = vsub.f32 %v190_v16, %v200_v17 }
  0xa6   :  { %v320_v21 = vpop.eup %319  ;;  %v205_v22 = vmul.f32 0.25, %v203_v18 }
  0xa7   :  { %v204_v2 = vmul.f32 0.25, %v202_v20  ;;  %v117_v23 = vmul.f32 %v320_v21, %v108_v49  ;;  %v322_v24 = vpop.eup %321 }
  0xa8   :  { %v209_v26 = vmul.f32 %v205_v22, %v205_v22  ;;  %v110_v31 = vmul.f32 %v322_v24, %v107_v52 }
  0xa9   :  { %v208_v29 = vmul.f32 %v204_v2, %v204_v2  ;;  %v119_v30 = vsel %vm118_vm9, %v108_v49, %v117_v23 }
  0xaa   :  { %v211_v32 = vadd.f32 %v209_v26, %v207_v25  ;;  %v122_v33 = vsel %vm120_vm10, %v121_v27, %v119_v30  ;;  %v112_v35 = vsel %vm111_vm11, %v107_v52, %v110_v31 }
  0xab   :  { %v210_v34 = vadd.f32 %v208_v29, %v206_v28  ;;  %125 = vrot.lane.b32.xlu1 %v122_v33, %s382_s20  ;;  %v115_v36 = vsel %vm113_vm12, %v114_v3, %v112_v35 }
  0xac   :  { %323 = vrsqrt.f32 %v211_v32  ;;  %123 = vrot.lane.b32.xlu0 %v115_v36, %s382_s20  ;;  %vm221_vm13 = vcmp.eq.f32.partialorder %v211_v32, inf  ;;  %v224_v40 = vand.u32 2147483648, %v211_v32  ;;  %vm223_vm14 = vcmp.eq.f32.partialorder %v211_v32, 0.0 }
  0xad   :  { %325 = vrsqrt.f32 %v210_v34  ;;  %vm214_vm15 = vcmp.eq.f32.partialorder %v210_v34, inf  ;;  %v217_v43 = vand.u32 2147483648, %v210_v34  ;;  %vm216_vm9 = vcmp.eq.f32.partialorder %v210_v34, 0.0 }
  0xb6   :  { %v324_v37 = vpop.eup %323 }
  0xb7   :  { %v326_v38 = vpop.eup %325  ;;  %v220_v39 = vmul.f32 %v324_v37, %v211_v32 }
  0xb8   :  { %v213_v41 = vmul.f32 %v326_v38, %v210_v34 }
  0xb9   :  { %v222_v42 = vsel %vm221_vm13, %v211_v32, %v220_v39 }
  0xba   :  { %v225_v44 = vsel %vm223_vm14, %v224_v40, %v222_v42  ;;  %v215_v45 = vsel %vm214_vm15, %v210_v34, %v213_v41 }
  0xbb   :  { %228 = vrot.lane.b32.xlu1 %v225_v44, %s382_s20  ;;  %v218_v46 = vsel %vm216_vm9, %v217_v43, %v215_v45 }
  0xbc   :  { %226 = vrot.lane.b32.xlu0 %v218_v46, %s382_s20 }
  0xbf   :  { %135 = vrot.lane.b32.xlu1 %v122_v33, %s383_s21 }
  0xc0   :  { %133 = vrot.lane.b32.xlu0 %v115_v36, %s383_s21 }
  0xc3   :  { %238 = vrot.lane.b32.xlu1 %v225_v44, %s383_s21 }
  0xc4   :  { %236 = vrot.lane.b32.xlu0 %v218_v46, %s383_s21 }
 0x11d   :  { %v126_v47 = vpop.permute.xlu1 %125 }
 0x11e   :  { %v124_v48 = vpop.permute.xlu0 %123 }
 0x11f   :  { %v128_v49 = vsel %vm73_vm0, %v126_v47, %v124_v48  ;;  %v127_v50 = vsel %vm73_vm0, %v124_v48, %v126_v47 }
 0x120   :  { %v129_v53 = vsel %vm448_vm2, %v115_v36, %v128_v49  ;;  %v130_v54 = vsel %vm452_vm3, %v122_v33, %v127_v50 }
 0x121   :  { %v131_v58 = vmax.f32 %v129_v53, %v115_v36  ;;  %v132_v60 = vmax.f32 %v130_v54, %v122_v33 }
 0x12d   :  { %v229_v51 = vpop.permute.xlu1 %228 }
 0x12e   :  { %v227_v52 = vpop.permute.xlu0 %226 }
 0x12f   :  { %v231_v55 = vsel %vm73_vm0, %v229_v51, %v227_v52  ;;  %v230_v56 = vsel %vm73_vm0, %v227_v52, %v229_v51 }
 0x130   :  { %v232_v61 = vsel %vm448_vm2, %v218_v46, %v231_v55  ;;  %v233_v0 = vsel %vm452_vm3, %v225_v44, %v230_v56 }
 0x131   :  { %v136_v57 = vpop.permute.xlu1 %135  ;;  %v234_v11 = vmax.f32 %v232_v61, %v218_v46  ;;  %v235_v13 = vmax.f32 %v233_v0, %v225_v44 }
 0x132   :  { %v134_v59 = vpop.permute.xlu0 %133 }
 0x133   :  { %v137_v62 = vsel %vm64_vm1, %v134_v59, %v136_v57  ;;  %v138_v63 = vsel %vm64_vm1, %v136_v57, %v134_v59 }
 0x134   :  { %v139_v1 = vsel %vm456_vm4, %v115_v36, %v137_v62  ;;  %v140_v4 = vsel %vm460_vm5, %v122_v33, %v138_v63 }
 0x135   :  { %v141_v7 = vmax.f32 %v131_v58, %v139_v1  ;;  %v142_v8 = vmax.f32 %v132_v60, %v140_v4  ;;  %v239_v9 = vpop.permute.xlu1 %238 }
 0x136   :  { %v237_v10 = vpop.permute.xlu0 %236 }
 0x137   :  { %v240_v16 = vsel %vm64_vm1, %v237_v10, %v239_v9  ;;  %v241_v17 = vsel %vm64_vm1, %v239_v9, %v237_v10  ;;  %145 = vrot.lane.b32.xlu1 %v142_v8, %s381_s17  ;;  %143 = vrot.lane.b32.xlu0 %v141_v7, %s381_s17 }
 0x138   :  { %v242_v12 = vsel %vm456_vm4, %v218_v46, %v240_v16  ;;  %v243_v18 = vsel %vm460_vm5, %v225_v44, %v241_v17 }
 0x139   :  { %v244_v19 = vmax.f32 %v234_v11, %v242_v12  ;;  %v245_v20 = vmax.f32 %v235_v13, %v243_v18 }
 0x13b   :  { %248 = vrot.lane.b32.xlu1 %v245_v20, %s381_s17  ;;  %246 = vrot.lane.b32.xlu0 %v244_v19, %s381_s17 }
 0x13f   :  { %155 = vrot.lane.b32.xlu1 %v142_v8, %s384_s22  ;;  %153 = vrot.lane.b32.xlu0 %v141_v7, %s384_s22 }
 0x143   :  { %258 = vrot.lane.b32.xlu1 %v245_v20, %s384_s22  ;;  %256 = vrot.lane.b32.xlu0 %v244_v19, %s384_s22 }
 0x1a9   :  { %v146_v21 = vpop.permute.xlu1 %145  ;;  %v144_v14 = vpop.permute.xlu0 %143 }
 0x1aa   :  { %v148_v15 = vsel %vm54_vm7, %v146_v21, %v144_v14  ;;  %v147_v29 = vsel %vm54_vm7, %v144_v14, %v146_v21 }
 0x1ab   :  { %v149_v26 = vsel %vm54_vm7, %v141_v7, %v148_v15  ;;  %v152_v36 = vmax.f32 %v147_v29, %v142_v8 }
 0x1ac   :  { %v151_v32 = vmax.f32 %v149_v26, %v141_v7 }
 0x1ad   :  { %v249_v22 = vpop.permute.xlu1 %248  ;;  %v247_v2 = vpop.permute.xlu0 %246 }
 0x1ae   :  { %v251_v23 = vsel %vm54_vm7, %v249_v22, %v247_v2  ;;  %v250_v30 = vsel %vm54_vm7, %v247_v2, %v249_v22 }
 0x1af   :  { %v252_v27 = vsel %vm54_vm7, %v244_v19, %v251_v23  ;;  %v255_v37 = vmax.f32 %v250_v30, %v245_v20 }
 0x1b0   :  { %v254_v34 = vmax.f32 %v252_v27, %v244_v19 }
 0x1b1   :  { %v156_v24 = vpop.permute.xlu1 %155  ;;  %v154_v25 = vpop.permute.xlu0 %153 }
 0x1b2   :  { %v158_v28 = vsel %vm86_vm6, %v156_v24, %v154_v25  ;;  %v157_v31 = vsel %vm86_vm6, %v154_v25, %v156_v24 }
 0x1b3   :  { %v160_v33 = vsel %vm57_vm8, %v142_v8, %v158_v28  ;;  %v161_v40 = vmax.f32 %v151_v32, %v157_v31 }
 0x1b4   :  { %v162_v43 = vmax.f32 %v152_v36, %v160_v33 }
 0x1b5   :  { %v259_v3 = vpop.permute.xlu1 %258  ;;  %v257_v35 = vpop.permute.xlu0 %256 }
 0x1b6   :  { %v260_v38 = vsel %vm86_vm6, %v257_v35, %v259_v3  ;;  %v261_v39 = vsel %vm86_vm6, %v259_v3, %v257_v35 }
 0x1b7   :  { %v263_v41 = vsel %vm57_vm8, %v245_v20, %v261_v39  ;;  %v264_v42 = vmax.f32 %v254_v34, %v260_v38 }
 0x1b8   :  { %v265_v44 = vmax.f32 %v255_v37, %v263_v41 }
 0x1b9   :  { %v266_v45 = vadd.f32 %v264_v42, %v161_v40 }
 0x1ba   :  { %v267_v46 = vadd.f32 %v265_v44, %v162_v43 }
 0x1bb   :  { %v268_v47 = vadd.f32 1e-05, %v266_v45 }
 0x1bc   :  { %v269_v48 = vadd.f32 1e-05, %v267_v46 }
 0x1bd   :  { %327 = vrcp.f32 %v268_v47 }
 0x1be   :  { %329 = vrcp.f32 %v269_v48 }
 0x1c7   :  { %v328_v49 = vpop.eup %327 }
 0x1c8   :  { %v330_v50 = vpop.eup %329  ;;  %v282_v51 = vmul.f32 %v328_v49, %v264_v42  ;;  %v274_v52 = vmul.f32 %v328_v49, %v161_v40 }
 0x1c9   :  { %v283_v53 = vmul.f32 %v330_v50, %v265_v44  ;;  %v275_v5 = vmul.f32 %v330_v50, %v162_v43 }
 0x1ca   :  { %v310_v54 = vadd.f32 -0.5, %v282_v51  ;;  %v308_v55 = vadd.f32 -0.5, %v274_v52 }
 0x1cb   :  { %v311_v6 = vadd.f32 -0.5, %v283_v53  ;;  %v309_v56 = vadd.f32 -0.5, %v275_v5 }
 0x1cc   :  { %v286_v57 = vmul.f32 2.0, %v310_v54  ;;  %v278_v58 = vmul.f32 2.0, %v308_v55 }
 0x1cd   :  { %v287_v59 = vmul.f32 2.0, %v311_v6  ;;  %v279_v60 = vmul.f32 2.0, %v309_v56 }
 0x1ce   :  { %289 = vst [vmem:[#allocation5 + $0x10] sm:$0xff] %v286_v57  ;;  %280 = vst [vmem:[#allocation5] sm:$0xff] %v278_v58 }
 0x1cf   :  { %290 = vst [vmem:[#allocation5 + $0x18] sm:$0xff] %v287_v59  ;;  %281 = vst [vmem:[#allocation5 + $0x8] sm:$0xff] %v279_v60 }
 0x1d0   :  { %364 = shalt.err (!%p361_p12)
}
 0x1d1   :  { %s365_s27 = scalar_lea.hbm %s617_s1, 512 }
 0x1d2   :  { %p366_p13 = scmp.ne.s32.totalorder %s617_s1, %s365_s27  ;;  %p369_p0 = scmp.lt.u32.totalorder %s365_s27, %s617_s1 }
 0x1d4   :  { %p371_p1 = pnand %p369_p0, %p366_p13 }
 0x1d6   :  { %374 = shalt.err (!%p371_p1)
}
 0x1d7   :  { %302 = dma.vmem_to_hbm [thread:$0]  %s297_s23, 512, %s617_s1, [#allocation4], %s380_s16, %s380_s16, %s381_s17  }
 0x1d8   :  { %377 = dma.done.wait [#allocation4], 512  }
 0x1d9   :  { %378 = vsyncadd [#allocation4], 4294966784 }
 0x1da   :  { %306 = vsyncpa [#allocation3], 1 }
 0x1db   :  { %307 = vsyncpa [#allocation4], 1 }

</bundles_post_ra>
